<compile_context>
chip_gen: v6e
topology: v6e:2x2x1
jax: 0.10.0
libtpu: 0.0.40
codegen_flags: <defaults>
</compile_context>

<pallas_src>
import jax
import jax.numpy as jnp
from jax.experimental import pallas as pl
from jax.experimental.pallas import tpu as pltpu

HIDDEN = 64
DEFAULT_TB = 4096   # batch rows per grid step for large batches (sweep 2048-8192)
SPLIT_MIN = 1024    # below this, one grid step: ~0.35us/step overhead dominates


def _round_up(x, m):
    return (x + m - 1) // m * m


def _choose_batch_tile(batch, batch_tile):
    """Pick the batch-tile size (multiple of 8 sublanes)."""
    batch_tile = max(8, _round_up(batch_tile, 8))
    rb = _round_up(batch, 8)
    if rb <= SPLIT_MIN:
        # Tiny batch: single (or few, if batch_tile is small) grid steps.
        return min(rb, batch_tile)
    if rb <= 2 * batch_tile:
        # Mid-size batch: exactly 2 roughly-even steps so the "parallel" grid
        # axis gives v7x's second TensorCore work (no-op on v5e/v6e).
        return _round_up(pl.cdiv(rb, 2), 8)
    return batch_tile


def qnetwork_kernel(x_ref, w1_ref, b1_ref, w2_ref, b2_ref, w3_ref, b3_ref, out_ref):
    """Fused MLP for one batch tile: fc1 -> ReLU -> fc2 -> ReLU -> fc3."""
    x = x_ref[...]                                              # (TB, S) f32

    # fc1 on the MXU in f32 (exact). K = state_size is tiny; Mosaic zero-pads
    # the contraction.  The MXU is essentially idle here, so this is ~free and
    # it unloads the VALU/XLU slots that the old broadcast chain occupied.
    h1 = jnp.dot(x, w1_ref[...], preferred_element_type=jnp.float32) + b1_ref[...]
    h1 = jnp.maximum(h1, 0.0)                                   # ReLU (f32 VPU)

    # fc2 (64x64) on the MXU: bf16 operands, f32 accumulation.
    h2 = jnp.dot(h1.astype(jnp.bfloat16), w2_ref[...],
                 preferred_element_type=jnp.float32) + b2_ref[...]
    h2 = jnp.maximum(h2, 0.0)                                   # ReLU (f32 VPU)

    # fc3 stays f32 (64 x action_size is trivial on the MXU) so near-tied
    # Q-values keep their argmax; the output block is the real narrow width.
    q = jnp.dot(h2, w3_ref[...], preferred_element_type=jnp.float32) + b3_ref[...]
    out_ref[...] = q.astype(out_ref.dtype)


def qnetwork_forward(state, params, *, batch_tile=DEFAULT_TB):
    """QNetwork forward. state: (B, state_size) f32 -> (B, action_size) f32."""
    w1, b1, w2, b2, w3, b3 = params
    batch, state_size = state.shape
    action_size = w3.shape[1]

    w2_bf = w2.astype(jnp.bfloat16)   # fc2 weights pre-cast for the MXU

    tb = _choose_batch_tile(batch, batch_tile)
    grid = (pl.cdiv(batch, tb),)      # partial last block is masked by Pallas

    # Weights/biases: full-array blocks with constant index_maps -> DMA'd once
    # and resident in VMEM across the whole grid (tiny: ~17 KiB total).
    def resident(a):
        return pl.BlockSpec(a.shape, lambda i: (0,) * a.ndim)

    out = pl.pallas_call(
        qnetwork_kernel,
        out_shape=jax.ShapeDtypeStruct((batch, action_size), jnp.float32),
        grid=grid,
        in_specs=[
            pl.BlockSpec((tb, state_size), lambda i: (i, 0)),   # streamed per tile
            resident(w1), resident(b1),
            resident(w2_bf), resident(b2),
            resident(w3), resident(b3),
        ],
        out_specs=pl.BlockSpec((tb, action_size), lambda i: (i, 0)),
        compiler_params=pltpu.CompilerParams(
            dimension_semantics=("parallel",)),                 # megacore on v7x
    )(state, w1, b1, w2_bf, b2, w3, b3)

    return out


def init_params(key, state_size, action_size):
    """Deterministic init mirroring nn.Linear's U(-1/sqrt(fan_in), 1/sqrt(fan_in))."""
    ks = jax.random.split(key, 6)

    def linear(kw, kb, fan_in, fan_out):
        bound = 1.0 / jnp.sqrt(fan_in)
        w = jax.random.uniform(kw, (fan_in, fan_out), jnp.float32, -bound, bound)
        b = jax.random.uniform(kb, (1, fan_out), jnp.float32, -bound, bound)
        return w, b

    w1, b1 = linear(ks[0], ks[1], state_size, HIDDEN)
    w2, b2 = linear(ks[2], ks[3], HIDDEN, HIDDEN)
    w3, b3 = linear(ks[4], ks[5], HIDDEN, action_size)
    return (w1, b1, w2, b2, w3, b3)


def reference_forward(state, params):
    """Pure-f32 JAX reference (exact PyTorch semantics, highest precision)."""
    w1, b1, w2, b2, w3, b3 = params
    hp = jax.lax.Precision.HIGHEST
    h1 = jnp.maximum(jnp.dot(state, w1, precision=hp) + b1, 0.0)
    h2 = jnp.maximum(jnp.dot(h1, w2, precision=hp) + b2, 0.0)
    return jnp.dot(h2, w3, precision=hp) + b3


if __name__ == "__main__":
    # CartPole-like dims: state_size=4, action_size=2.
    state_size, action_size = 4, 2
    key = jax.random.PRNGKey(0)
    kp, k1, k2, k3 = jax.random.split(key, 4)
    params = init_params(kp, state_size, action_size)

    def check(state, **kw):
        out = jax.block_until_ready(qnetwork_forward(state, params, **kw))
        ref = reference_forward(state, params)
        assert out.shape == ref.shape, (out.shape, ref.shape)
        assert jnp.allclose(out, ref, atol=5e-2, rtol=5e-2), (
            "max abs diff %f" % float(jnp.max(jnp.abs(out - ref))))
        return out

    # Case 1: tiny batch, single exact block.
    check(jax.random.normal(k1, (8, state_size), dtype=jnp.float32))
    # Case 2: batch not a multiple of 8 -> single partial block (masked writeback).
    check(jax.random.normal(k2, (50, state_size), dtype=jnp.float32))
    # Case 3: multi-step grid with a partial tail block (200 rows, tile 64 -> 4 steps).
    check(jax.random.normal(k3, (200, state_size), dtype=jnp.float32), batch_tile=64)

    print("KERNEL_OK")
</pallas_src>

<mosaic_0001>
module attributes {stable_mosaic.version = 11 : i64} {
  func.func @qnetwork_kernel(%arg0: i32, %arg1: memref<8x4xf32, #tpu.memory_space<vmem>>, %arg2: memref<4x64xf32, #tpu.memory_space<vmem>>, %arg3: memref<1x64xf32, #tpu.memory_space<vmem>>, %arg4: memref<64x64xbf16, #tpu.memory_space<vmem>>, %arg5: memref<1x64xf32, #tpu.memory_space<vmem>>, %arg6: memref<64x2xf32, #tpu.memory_space<vmem>>, %arg7: memref<1x2xf32, #tpu.memory_space<vmem>>, %arg8: memref<8x2xf32, #tpu.memory_space<vmem>>) attributes {dimension_semantics = [#tpu.dimension_semantics<parallel>], iteration_bounds = array<i64: 1>, scalar_prefetch = 0 : i64, scratch_operands = 0 : i64, tpu.core_type = #tpu.core_type<tc>, window_params = [{transform_indices = @transform_0, window_bounds = array<i64: 8, 4>}, {pipeline_mode = #tpu.pipeline_mode<synchronous>, transform_indices = @transform_1, window_bounds = array<i64: 4, 64>}, {pipeline_mode = #tpu.pipeline_mode<synchronous>, transform_indices = @transform_2, window_bounds = array<i64: 1, 64>}, {pipeline_mode = #tpu.pipeline_mode<synchronous>, transform_indices = @transform_3, window_bounds = array<i64: 64, 64>}, {pipeline_mode = #tpu.pipeline_mode<synchronous>, transform_indices = @transform_4, window_bounds = array<i64: 1, 64>}, {pipeline_mode = #tpu.pipeline_mode<synchronous>, transform_indices = @transform_5, window_bounds = array<i64: 64, 2>}, {pipeline_mode = #tpu.pipeline_mode<synchronous>, transform_indices = @transform_6, window_bounds = array<i64: 1, 2>}, {transform_indices = @transform_7, window_bounds = array<i64: 8, 2>}]} {
    %c0 = arith.constant 0 : index
    %c0_0 = arith.constant 0 : index
    %0 = vector.load %arg1[%c0, %c0_0] : memref<8x4xf32, #tpu.memory_space<vmem>>, vector<8x4xf32>
    %c0_1 = arith.constant 0 : index
    %c0_2 = arith.constant 0 : index
    %1 = vector.load %arg2[%c0_1, %c0_2] : memref<4x64xf32, #tpu.memory_space<vmem>>, vector<4x64xf32>
    %cst = arith.constant dense<0.000000e+00> : vector<8x64xf32>
    %2 = tpu.matmul %0, %1, %cst {dimension_numbers = #tpu.dot_dimension_numbers<[1], [0], [0], [1], [0, 0, 1, 1], [], []>} : vector<8x4xf32>, vector<4x64xf32>, vector<8x64xf32> -> vector<8x64xf32>
    %c0_3 = arith.constant 0 : index
    %c0_4 = arith.constant 0 : index
    %3 = vector.load %arg3[%c0_3, %c0_4] : memref<1x64xf32, #tpu.memory_space<vmem>>, vector<1x64xf32>
    %4 = vector.broadcast %3 : vector<1x64xf32> to vector<8x64xf32>
    %5 = arith.addf %2, %4 : vector<8x64xf32>
    %cst_5 = arith.constant 0.000000e+00 : f32
    %6 = vector.broadcast %cst_5 : f32 to vector<8x64xf32>
    %7 = arith.maximumf %5, %6 : vector<8x64xf32>
    %8 = arith.truncf %7 : vector<8x64xf32> to vector<8x64xbf16>
    %c0_6 = arith.constant 0 : index
    %c0_7 = arith.constant 0 : index
    %9 = vector.load %arg4[%c0_6, %c0_7] : memref<64x64xbf16, #tpu.memory_space<vmem>>, vector<64x64xbf16>
    %cst_8 = arith.constant dense<0.000000e+00> : vector<8x64xf32>
    %10 = tpu.matmul %8, %9, %cst_8 {dimension_numbers = #tpu.dot_dimension_numbers<[1], [0], [0], [1], [0, 0, 1, 1], [], []>} : vector<8x64xbf16>, vector<64x64xbf16>, vector<8x64xf32> -> vector<8x64xf32>
    %c0_9 = arith.constant 0 : index
    %c0_10 = arith.constant 0 : index
    %11 = vector.load %arg5[%c0_9, %c0_10] : memref<1x64xf32, #tpu.memory_space<vmem>>, vector<1x64xf32>
    %12 = vector.broadcast %11 : vector<1x64xf32> to vector<8x64xf32>
    %13 = arith.addf %10, %12 : vector<8x64xf32>
    %cst_11 = arith.constant 0.000000e+00 : f32
    %14 = vector.broadcast %cst_11 : f32 to vector<8x64xf32>
    %15 = arith.maximumf %13, %14 : vector<8x64xf32>
    %c0_12 = arith.constant 0 : index
    %c0_13 = arith.constant 0 : index
    %16 = vector.load %arg6[%c0_12, %c0_13] : memref<64x2xf32, #tpu.memory_space<vmem>>, vector<64x2xf32>
    %cst_14 = arith.constant dense<0.000000e+00> : vector<8x2xf32>
    %17 = tpu.matmul %15, %16, %cst_14 {dimension_numbers = #tpu.dot_dimension_numbers<[1], [0], [0], [1], [0, 0, 1, 1], [], []>} : vector<8x64xf32>, vector<64x2xf32>, vector<8x2xf32> -> vector<8x2xf32>
    %c0_15 = arith.constant 0 : index
    %c0_16 = arith.constant 0 : index
    %18 = vector.load %arg7[%c0_15, %c0_16] : memref<1x2xf32, #tpu.memory_space<vmem>>, vector<1x2xf32>
    %19 = vector.broadcast %18 : vector<1x2xf32> to vector<8x2xf32>
    %20 = arith.addf %17, %19 : vector<8x2xf32>
    %c0_17 = arith.constant 0 : index
    %c0_18 = arith.constant 0 : index
    %21 = vector.load %arg8[%c0_17, %c0_18] : memref<8x2xf32, #tpu.memory_space<vmem>>, vector<8x2xf32>
    tpu.vector_store %arg8[%c0_17, %c0_18], %20 {strides = array<i32>} : memref<8x2xf32, #tpu.memory_space<vmem>>, vector<8x2xf32>,
    return
  }
  func.func @transform_0(%arg0: i32) -> (i32, i32) {
    %c0_i32 = arith.constant 0 : i32
    %c0_i32_0 = arith.constant 0 : i32
    return %arg0, %c0_i32 : i32, i32
  }
  func.func @transform_1(%arg0: i32) -> (i32, i32) {
    %c0_i32 = arith.constant 0 : i32
    %c0_i32_0 = arith.constant 0 : i32
    %c0_i32_1 = arith.constant 0 : i32
    return %c0_i32, %c0_i32_0 : i32, i32
  }
  func.func @transform_2(%arg0: i32) -> (i32, i32) {
    %c0_i32 = arith.constant 0 : i32
    %c0_i32_0 = arith.constant 0 : i32
    %c0_i32_1 = arith.constant 0 : i32
    return %c0_i32, %c0_i32_0 : i32, i32
  }
  func.func @transform_3(%arg0: i32) -> (i32, i32) {
    %c0_i32 = arith.constant 0 : i32
    %c0_i32_0 = arith.constant 0 : i32
    %c0_i32_1 = arith.constant 0 : i32
    return %c0_i32, %c0_i32_0 : i32, i32
  }
  func.func @transform_4(%arg0: i32) -> (i32, i32) {
    %c0_i32 = arith.constant 0 : i32
    %c0_i32_0 = arith.constant 0 : i32
    %c0_i32_1 = arith.constant 0 : i32
    return %c0_i32, %c0_i32_0 : i32, i32
  }
  func.func @transform_5(%arg0: i32) -> (i32, i32) {
    %c0_i32 = arith.constant 0 : i32
    %c0_i32_0 = arith.constant 0 : i32
    %c0_i32_1 = arith.constant 0 : i32
    return %c0_i32, %c0_i32_0 : i32, i32
  }
  func.func @transform_6(%arg0: i32) -> (i32, i32) {
    %c0_i32 = arith.constant 0 : i32
    %c0_i32_0 = arith.constant 0 : i32
    %c0_i32_1 = arith.constant 0 : i32
    return %c0_i32, %c0_i32_0 : i32, i32
  }
  func.func @transform_7(%arg0: i32) -> (i32, i32) {
    %c0_i32 = arith.constant 0 : i32
    %c0_i32_0 = arith.constant 0 : i32
    return %arg0, %c0_i32 : i32, i32
  }
}

</mosaic_0001>

<bundles_post_ra>
// kernel: tpu_custom_call.1
= control target key start
LH: loop header
LB: loop body
LE: loop exit
PB: predicated region body
PF: predicated region fallthrough
CT: control target
= control target key end

     0   :  { %vm40_vm0 = vcmask 1043456   ;;  %vm36_vm1 = vcmask 31744   ;;  %v363_v0 = vmov 0.0   ;;  %vm364_vm2 = vmmov 0   ;;  %s461_s1 = inlined_call_operand.vmem [shape: f32[4,64], index: 1, kind: input, shape index: {}]   ;;  %s462_s0 = inlined_call_operand.vmem [shape: f32[8,4], index: 0, kind: input, shape index: {}]   ;;  %s463_s3 = inlined_call_operand.vmem [shape: bf16[64,64], index: 3, kind: input, shape index: {}]   ;;  %s464_s5 = inlined_call_operand.vmem [shape: f32[64,2], index: 5, kind: input, shape index: {}]   ;;  %s465_s2 = inlined_call_operand.vmem [shape: f32[1,64], index: 2, kind: input, shape index: {}]   ;;  %s466_s4 = inlined_call_operand.vmem [shape: f32[1,64], index: 4, kind: input, shape index: {}]   ;;  %s467_s6 = inlined_call_operand.vmem [shape: f32[1,2], index: 6, kind: input, shape index: {}]   ;;  %s468_s7 = inlined_call_operand.vmem [shape: f32[8,2], index: 7, kind: output, shape index: {}]  }
   0x1   :  { %321 = vmatprep.subr.mxu0 %v363_v0  ;;  %v28_v1 = vld [vmem:[%s461_s1] sm:$0xf]  ;;  %323 = vmatprep.mubr.msk.f32.mxu0 %vm364_vm2, %v363_v0  ;;  %v359_v3 = vld [vmem:[%s463_s3 + $0x18] sm:$0xff]   ;;  %v360_v4 = vld [vmem:[%s463_s3 + $0x10] sm:$0xff]   ;;  %vm155_vm3 = vcmask 523264   ;;  %vm288_vm4 = vcmask 15360  }
   0x2   :  { %v27_v2 = vld [vmem:[%s462_s0] sm:$0xff]  ;;  %322 = vmatpush3.msk.msra.mxu0 %vm40_vm0, %v28_v1  ;;  %326 = vmatprep.subr.bf16.mxu1 %v363_v0  ;;  %v361_v5 = vld [vmem:[%s463_s3 + $0x8] sm:$0xff]   ;;  %v207_v7 = vld [vmem:[%s464_s5 + $0x38] sm:$0xff] }
   0x3   :  { %324 = vmatmul.mubr.msk.f32.vlgmr.msra.gmra.mxu0 %vm36_vm1, %v27_v2  ;;  %334 = vmatprep.mubr.msk.bf16.mxu1 %vm364_vm2, %v363_v0  ;;  %v362_v6 = vld [vmem:[%s463_s3] sm:$0xff]   ;;  %v206_v8 = vld [vmem:[%s464_s5 + $0x30] sm:$0xff]  ;;  %v205_v9 = vld [vmem:[%s464_s5 + $0x28] sm:$0xff] }
   0x4   :  { %327 = vmatpush3.bf16.msra.mxu1 %v359_v3  ;;  %338 = vmatprep.subr.mxu0 %v363_v0  ;;  %v204_v10 = vld [vmem:[%s464_s5 + $0x20] sm:$0xff]  ;;  %v203_v11 = vld [vmem:[%s464_s5 + $0x18] sm:$0xff]  ;;  %v202_v18 = vld [vmem:[%s464_s5 + $0x10] sm:$0xff] }
   0x5   :  { %328 = vmatprep.subr.bf16.mxu1 %v363_v0  ;;  %354 = vmatprep.mubr.msk.f32.mxu0 %vm364_vm2, %v363_v0  ;;  %v294_v12 = vld [vmem:[%s465_s2] ss:$0 sm:$0xff]  ;;  %v201_v19 = vld [vmem:[%s464_s5 + $0x8] sm:$0xff] }
   0x6   :  { %339 = vmatpush3.msra.mxu0 %v207_v7  ;;  %v200_v20 = vld [vmem:[%s464_s5] sm:$0xff] }
   0x7   :  { %340 = vmatprep.subr.mxu0 %v363_v0  ;;  %v297_v21 = vld [vmem:[%s466_s4] ss:$0 sm:$0xff] }
   0x8   :  { %329 = vmatpush3.bf16.msra.mxu1 %v360_v4  ;;  %341 = vmatpush3.msra.mxu0 %v206_v8  ;;  %v303_v28 = vld [vmem:[%s467_s6] ss:$0 sm:$0xff] }
   0x9   :  { %330 = vmatprep.subr.bf16.mxu1 %v363_v0  ;;  %342 = vmatprep.subr.mxu0 %v363_v0 }
   0xa   :  { %343 = vmatpush3.msra.mxu0 %v205_v9 }
   0xb   :  { %344 = vmatprep.subr.mxu0 %v363_v0 }
   0xc   :  { %331 = vmatpush3.bf16.msra.mxu1 %v361_v5  ;;  %345 = vmatpush3.msra.mxu0 %v204_v10 }
   0xd   :  { %332 = vmatprep.subr.bf16.mxu1 %v363_v0  ;;  %346 = vmatprep.subr.mxu0 %v363_v0 }
   0xe   :  { %347 = vmatpush3.msra.mxu0 %v203_v11 }
   0xf   :  { %348 = vmatprep.subr.mxu0 %v363_v0 }
  0x10   :  { %333 = vmatpush3.bf16.msra.mxu1 %v362_v6  ;;  %349 = vmatpush3.msra.mxu0 %v202_v18 }
  0x11   :  { %350 = vmatprep.subr.mxu0 %v363_v0 }
  0x12   :  { %351 = vmatpush3.msra.mxu0 %v201_v19 }
  0x13   :  { %352 = vmatprep.subr.mxu0 %v363_v0 }
  0x14   :  { %353 = vmatpush3.msra.mxu0 %v200_v20 }
  0xc3   :  { %v110_v13 = vpop.f32.mrf.mxu0 }
  0xc4   :  { %v111_v14 = vadd.f32 %v294_v12, %v110_v13 }
  0xc5   :  { %v325_v15 = vpop.f32.mrf.mxu0 }
  0xc6   :  { %v114_v16 = vmax.f32 %v111_v14, 0.0 }
  0xc8   :  { %v115_v17 = vpack.c.bf16 %v114_v16, %v114_v16 }
  0xca   :  { %335 = vmatmul.mubr.msk.bf16.vlgmr.msra.gmra.mxu1 %vm155_vm3, %v115_v17 }
 0x18a   :  { %v193_v22 = vpop.f32.mrf.mxu1 }
 0x18b   :  { %v194_v23 = vadd.f32 %v297_v21, %v193_v22 }
 0x18c   :  { %v336_v24 = vpop.f32.mrf.mxu1 }
 0x18d   :  { %v199_v25 = vmax.f32 %v194_v23, 0.0 }
 0x18e   :  { %v196_v26 = vpop.f32.mrf.mxu1 }
 0x18f   :  { %355 = vmatmul.mubr.msk.f32.vlgmr.msra.gmra.mxu0 %vm155_vm3, %v199_v25 }
 0x190   :  { %v337_v27 = vpop.f32.mrf.mxu1 }
 0x24f   :  { %v284_v29 = vpop.f32.mrf.mxu0 }
 0x250   :  { %v285_v30 = vadd.f32 %v303_v28, %v284_v29 }
 0x251   :  { %v356_v31 = vpop.f32.mrf.mxu0 }
 0x252   :  { %289 = vst.msk [vmem:[%s468_s7] sm:$0xff] %vm288_vm4, %v285_v30 }

</bundles_post_ra>
